<compile_context>
chip_gen: v7x
topology: tpu7x:2x2x1
jax: 0.10.0
libtpu: 0.0.40
codegen_flags: <defaults>
</compile_context>

<pallas_src>
import functools

import jax
import jax.numpy as jnp
from jax.experimental import pallas as pl
from jax.experimental.pallas import tpu as pltpu


def _largest_divisor_leq(n, cap):
    cap = max(1, min(n, cap))
    for d in range(cap, 0, -1):
        if n % d == 0:
            return d
    return 1


# ----------------------------------------------------------------------------
# Kernels (pure data movement)
# ----------------------------------------------------------------------------
def _copy_kernel(x_ref, o_ref):
    # (TR, A, B) -> (TR, A, B); the leading-axis permutation is expressed
    # entirely through the BlockSpec index maps (free DMA re-indexing).
    o_ref[...] = x_ref[...]


def _swap_minor_kernel(x_ref, o_ref):
    # (TR, A, B) -> (TR, B, A): per-row 2-D transpose.  TR is small and static
    # so the Python loop is fully unrolled (LLO scheduler visibility).
    for i in range(x_ref.shape[0]):
        o_ref[i] = x_ref[i].T


def _make_swap_sublane_leading_kernel(h_dim):
    # (TR, C, H, W) -> (TR, H, C, W): lane axis fixed, swap leading C with
    # sublane H.  Loop over H so every STORE is a dense (TR, C, W) slab
    # (stores are the scarce slot, especially on v5e); the sublane-indexed
    # loads use the more plentiful load slots.
    def kernel(x_ref, o_ref):
        for h in range(h_dim):            # static & small -> fully unrolled
            o_ref[:, h, :, :] = x_ref[:, :, h, :]
    return kernel


# ----------------------------------------------------------------------------
# 4-D permutation via pallas_call
# ----------------------------------------------------------------------------
def _permute4(x, axes, row_block):
    N0, N1, N2, N3 = x.shape
    out_shape = tuple(x.shape[a] for a in axes)

    if axes[2:] in ((2, 3), (3, 2)):
        # ---- minor axes stay minor (possibly swapped) -----------------------
        # Grid over input axes 0 (blocked by TR) and 1 (size-1, squeezed);
        # both are leading on the input AND on the output, so block sizes are
        # unconstrained and the minor blocks stay full (lane-dense I/O).
        tr = _largest_divisor_leq(N0, row_block)
        if (N0 // tr) * N1 < 2 and tr > 1:   # keep >=2 grid steps (v7x megacore)
            tr = _largest_divisor_leq(N0, tr // 2)
        grid = (N0 // tr, N1)

        p0, p1 = axes.index(0), axes.index(1)   # output positions of input 0/1
        out_block = [None, None, out_shape[2], out_shape[3]]
        out_block[p0] = tr                      # p1 stays squeezed (None)

        def out_map(r, j, _p0=p0, _p1=p1):
            idx = [0, 0, 0, 0]
            idx[_p0], idx[_p1] = r, j
            return tuple(idx)

        kernel = _copy_kernel if axes[2:] == (2, 3) else _swap_minor_kernel
        return pl.pallas_call(
            kernel,
            out_shape=jax.ShapeDtypeStruct(out_shape, x.dtype),
            grid=grid,
            in_specs=[pl.BlockSpec((tr, None, N2, N3), lambda r, j: (r, j, 0, 0))],
            out_specs=pl.BlockSpec(tuple(out_block), out_map),
            compiler_params=pltpu.CompilerParams(
                dimension_semantics=("parallel", "parallel")),
        )(x)

    if axes == (0, 2, 1, 3):
        # ---- swap a leading axis with the sublane axis (lane fixed) ---------
        # Block is full along C, H, W (satisfies the (8,128) rule on both
        # sides); grid only over the batch axis, row-batched by TR.
        tr = _largest_divisor_leq(N0, row_block)
        if N0 // tr < 2 and tr > 1:          # give both v7x TensorCores work
            tr = _largest_divisor_leq(N0, tr // 2)
        grid = (N0 // tr,)
        return pl.pallas_call(
            _make_swap_sublane_leading_kernel(N2),
            out_shape=jax.ShapeDtypeStruct(out_shape, x.dtype),
            grid=grid,
            in_specs=[pl.BlockSpec((tr, N1, N2, N3), lambda r: (r, 0, 0, 0))],
            out_specs=pl.BlockSpec((tr, N2, N1, N3), lambda r: (r, 0, 0, 0)),
            compiler_params=pltpu.CompilerParams(
                dimension_semantics=("parallel",)),
        )(x)

    # TODO(synk): permutations that move the lane axis to a leading position
    #             (e.g. (0, 3, 1, 2)) are not implemented in this kernel.
    raise NotImplementedError(f"Permute axes {axes} not supported by this kernel")


# ----------------------------------------------------------------------------
# Public wrapper: Permute.forward
# ----------------------------------------------------------------------------
@functools.partial(jax.jit, static_argnums=(1,), static_argnames=("row_block",))
def permute_pallas(x, axes, *, row_block=8):
    """Pallas TPU implementation of ``x.permute(axes)``."""
    axes = tuple(int(a) for a in axes)
    if sorted(axes) != list(range(x.ndim)):
        raise ValueError(f"axes {axes} is not a permutation of {x.ndim} dims")
    if axes == tuple(range(x.ndim)):
        return x
    if x.ndim > 4:
        # TODO(synk): >4-D permutations are not implemented.
        raise NotImplementedError("only inputs with <= 4 dims are supported")

    # Canonicalize to 4-D by prepending singleton axes (free reshape); the
    # prepended axes stay in front of the output, so they are squeezed back.
    pad = 4 - x.ndim
    x4 = x.reshape((1,) * pad + x.shape)
    axes4 = tuple(range(pad)) + tuple(a + pad for a in axes)
    out4 = _permute4(x4, axes4, row_block)
    return out4.reshape(out4.shape[pad:])


# ----------------------------------------------------------------------------
if __name__ == "__main__":
    key = jax.random.PRNGKey(0)
    # (batch, channels, electrodes, time): small but lane-friendly (last dim 128)
    x = jax.random.normal(key, (2, 4, 16, 128), jnp.float32)

    cases_4d = [
        (0, 2, 1, 3),   # NCHW -> NHCW : move channel axis inward
        (0, 1, 3, 2),   # swap the two minor axes
        (1, 0, 2, 3),   # leading-dim shuffle (pure BlockSpec remap)
        (1, 0, 3, 2),   # leading shuffle + minor swap
    ]
    for axes in cases_4d:
        y = jax.block_until_ready(permute_pallas(x, axes))
        y_ref = jnp.transpose(x, axes)
        assert y.shape == y_ref.shape, (axes, y.shape, y_ref.shape)
        assert bool(jnp.array_equal(y, y_ref)), f"mismatch for axes={axes}"

    # 3-D input (canonicalized to 4-D inside the wrapper), the classic
    # Permute([0, 2, 1]) usage.
    x3 = x[:, 0]                                        # (2, 16, 128)
    y3 = jax.block_until_ready(permute_pallas(x3, (0, 2, 1)))
    assert bool(jnp.array_equal(y3, jnp.transpose(x3, (0, 2, 1))))

    print("KERNEL_OK")
</pallas_src>

<mosaic_0001>
module attributes {stable_mosaic.version = 11 : i64} {
  func.func @kernel(%arg0: i32, %arg1: memref<1x4x16x128xf32, #tpu.memory_space<vmem>>, %arg2: memref<1x16x4x128xf32, #tpu.memory_space<vmem>>) attributes {dimension_semantics = [#tpu.dimension_semantics<parallel>], iteration_bounds = array<i64: 2>, scalar_prefetch = 0 : i64, scratch_operands = 0 : i64, tpu.core_type = #tpu.core_type<tc>, window_params = [{transform_indices = @transform_0, window_bounds = array<i64: 1, 4, 16, 128>}, {transform_indices = @transform_1, window_bounds = array<i64: 1, 16, 4, 128>}]} {
    %c0 = arith.constant 0 : index
    %c0_0 = arith.constant 0 : index
    %c0_1 = arith.constant 0 : index
    %c0_2 = arith.constant 0 : index
    %0 = vector.load %arg1[%c0, %c0_0, %c0_1, %c0_2] : memref<1x4x16x128xf32, #tpu.memory_space<vmem>>, vector<1x4x1x128xf32>
    %1 = vector.shape_cast %0 : vector<1x4x1x128xf32> to vector<1x4x128xf32>
    %c0_3 = arith.constant 0 : index
    %c0_4 = arith.constant 0 : index
    %c0_5 = arith.constant 0 : index
    %c0_6 = arith.constant 0 : index
    %2 = vector.load %arg2[%c0_3, %c0_4, %c0_5, %c0_6] : memref<1x16x4x128xf32, #tpu.memory_space<vmem>>, vector<1x1x4x128xf32>
    %3 = vector.shape_cast %2 : vector<1x1x4x128xf32> to vector<1x4x128xf32>
    %4 = vector.shape_cast %1 : vector<1x4x128xf32> to vector<1x1x4x128xf32>
    tpu.vector_store %arg2[%c0_3, %c0_4, %c0_5, %c0_6], %4 {strides = array<i32>} : memref<1x16x4x128xf32, #tpu.memory_space<vmem>>, vector<1x1x4x128xf32>,
    %c0_7 = arith.constant 0 : index
    %c0_8 = arith.constant 0 : index
    %c1 = arith.constant 1 : index
    %c0_9 = arith.constant 0 : index
    %5 = vector.load %arg1[%c0_7, %c0_8, %c1, %c0_9] : memref<1x4x16x128xf32, #tpu.memory_space<vmem>>, vector<1x4x1x128xf32>
    %6 = vector.shape_cast %5 : vector<1x4x1x128xf32> to vector<1x4x128xf32>
    %c0_10 = arith.constant 0 : index
    %c1_11 = arith.constant 1 : index
    %c0_12 = arith.constant 0 : index
    %c0_13 = arith.constant 0 : index
    %7 = vector.load %arg2[%c0_10, %c1_11, %c0_12, %c0_13] : memref<1x16x4x128xf32, #tpu.memory_space<vmem>>, vector<1x1x4x128xf32>
    %8 = vector.shape_cast %7 : vector<1x1x4x128xf32> to vector<1x4x128xf32>
    %9 = vector.shape_cast %6 : vector<1x4x128xf32> to vector<1x1x4x128xf32>
    tpu.vector_store %arg2[%c0_10, %c1_11, %c0_12, %c0_13], %9 {strides = array<i32>} : memref<1x16x4x128xf32, #tpu.memory_space<vmem>>, vector<1x1x4x128xf32>,
    %c0_14 = arith.constant 0 : index
    %c0_15 = arith.constant 0 : index
    %c2 = arith.constant 2 : index
    %c0_16 = arith.constant 0 : index
    %10 = vector.load %arg1[%c0_14, %c0_15, %c2, %c0_16] : memref<1x4x16x128xf32, #tpu.memory_space<vmem>>, vector<1x4x1x128xf32>
    %11 = vector.shape_cast %10 : vector<1x4x1x128xf32> to vector<1x4x128xf32>
    %c0_17 = arith.constant 0 : index
    %c2_18 = arith.constant 2 : index
    %c0_19 = arith.constant 0 : index
    %c0_20 = arith.constant 0 : index
    %12 = vector.load %arg2[%c0_17, %c2_18, %c0_19, %c0_20] : memref<1x16x4x128xf32, #tpu.memory_space<vmem>>, vector<1x1x4x128xf32>
    %13 = vector.shape_cast %12 : vector<1x1x4x128xf32> to vector<1x4x128xf32>
    %14 = vector.shape_cast %11 : vector<1x4x128xf32> to vector<1x1x4x128xf32>
    tpu.vector_store %arg2[%c0_17, %c2_18, %c0_19, %c0_20], %14 {strides = array<i32>} : memref<1x16x4x128xf32, #tpu.memory_space<vmem>>, vector<1x1x4x128xf32>,
    %c0_21 = arith.constant 0 : index
    %c0_22 = arith.constant 0 : index
    %c3 = arith.constant 3 : index
    %c0_23 = arith.constant 0 : index
    %15 = vector.load %arg1[%c0_21, %c0_22, %c3, %c0_23] : memref<1x4x16x128xf32, #tpu.memory_space<vmem>>, vector<1x4x1x128xf32>
    %16 = vector.shape_cast %15 : vector<1x4x1x128xf32> to vector<1x4x128xf32>
    %c0_24 = arith.constant 0 : index
    %c3_25 = arith.constant 3 : index
    %c0_26 = arith.constant 0 : index
    %c0_27 = arith.constant 0 : index
    %17 = vector.load %arg2[%c0_24, %c3_25, %c0_26, %c0_27] : memref<1x16x4x128xf32, #tpu.memory_space<vmem>>, vector<1x1x4x128xf32>
    %18 = vector.shape_cast %17 : vector<1x1x4x128xf32> to vector<1x4x128xf32>
    %19 = vector.shape_cast %16 : vector<1x4x128xf32> to vector<1x1x4x128xf32>
    tpu.vector_store %arg2[%c0_24, %c3_25, %c0_26, %c0_27], %19 {strides = array<i32>} : memref<1x16x4x128xf32, #tpu.memory_space<vmem>>, vector<1x1x4x128xf32>,
    %c0_28 = arith.constant 0 : index
    %c0_29 = arith.constant 0 : index
    %c4 = arith.constant 4 : index
    %c0_30 = arith.constant 0 : index
    %20 = vector.load %arg1[%c0_28, %c0_29, %c4, %c0_30] : memref<1x4x16x128xf32, #tpu.memory_space<vmem>>, vector<1x4x1x128xf32>
    %21 = vector.shape_cast %20 : vector<1x4x1x128xf32> to vector<1x4x128xf32>
    %c0_31 = arith.constant 0 : index
    %c4_32 = arith.constant 4 : index
    %c0_33 = arith.constant 0 : index
    %c0_34 = arith.constant 0 : index
    %22 = vector.load %arg2[%c0_31, %c4_32, %c0_33, %c0_34] : memref<1x16x4x128xf32, #tpu.memory_space<vmem>>, vector<1x1x4x128xf32>
    %23 = vector.shape_cast %22 : vector<1x1x4x128xf32> to vector<1x4x128xf32>
    %24 = vector.shape_cast %21 : vector<1x4x128xf32> to vector<1x1x4x128xf32>
    tpu.vector_store %arg2[%c0_31, %c4_32, %c0_33, %c0_34], %24 {strides = array<i32>} : memref<1x16x4x128xf32, #tpu.memory_space<vmem>>, vector<1x1x4x128xf32>,
    %c0_35 = arith.constant 0 : index
    %c0_36 = arith.constant 0 : index
    %c5 = arith.constant 5 : index
    %c0_37 = arith.constant 0 : index
    %25 = vector.load %arg1[%c0_35, %c0_36, %c5, %c0_37] : memref<1x4x16x128xf32, #tpu.memory_space<vmem>>, vector<1x4x1x128xf32>
    %26 = vector.shape_cast %25 : vector<1x4x1x128xf32> to vector<1x4x128xf32>
    %c0_38 = arith.constant 0 : index
    %c5_39 = arith.constant 5 : index
    %c0_40 = arith.constant 0 : index
    %c0_41 = arith.constant 0 : index
    %27 = vector.load %arg2[%c0_38, %c5_39, %c0_40, %c0_41] : memref<1x16x4x128xf32, #tpu.memory_space<vmem>>, vector<1x1x4x128xf32>
    %28 = vector.shape_cast %27 : vector<1x1x4x128xf32> to vector<1x4x128xf32>
    %29 = vector.shape_cast %26 : vector<1x4x128xf32> to vector<1x1x4x128xf32>
    tpu.vector_store %arg2[%c0_38, %c5_39, %c0_40, %c0_41], %29 {strides = array<i32>} : memref<1x16x4x128xf32, #tpu.memory_space<vmem>>, vector<1x1x4x128xf32>,
    %c0_42 = arith.constant 0 : index
    %c0_43 = arith.constant 0 : index
    %c6 = arith.constant 6 : index
    %c0_44 = arith.constant 0 : index
    %30 = vector.load %arg1[%c0_42, %c0_43, %c6, %c0_44] : memref<1x4x16x128xf32, #tpu.memory_space<vmem>>, vector<1x4x1x128xf32>
    %31 = vector.shape_cast %30 : vector<1x4x1x128xf32> to vector<1x4x128xf32>
    %c0_45 = arith.constant 0 : index
    %c6_46 = arith.constant 6 : index
    %c0_47 = arith.constant 0 : index
    %c0_48 = arith.constant 0 : index
    %32 = vector.load %arg2[%c0_45, %c6_46, %c0_47, %c0_48] : memref<1x16x4x128xf32, #tpu.memory_space<vmem>>, vector<1x1x4x128xf32>
    %33 = vector.shape_cast %32 : vector<1x1x4x128xf32> to vector<1x4x128xf32>
    %34 = vector.shape_cast %31 : vector<1x4x128xf32> to vector<1x1x4x128xf32>
    tpu.vector_store %arg2[%c0_45, %c6_46, %c0_47, %c0_48], %34 {strides = array<i32>} : memref<1x16x4x128xf32, #tpu.memory_space<vmem>>, vector<1x1x4x128xf32>,
    %c0_49 = arith.constant 0 : index
    %c0_50 = arith.constant 0 : index
    %c7 = arith.constant 7 : index
    %c0_51 = arith.constant 0 : index
    %35 = vector.load %arg1[%c0_49, %c0_50, %c7, %c0_51] : memref<1x4x16x128xf32, #tpu.memory_space<vmem>>, vector<1x4x1x128xf32>
    %36 = vector.shape_cast %35 : vector<1x4x1x128xf32> to vector<1x4x128xf32>
    %c0_52 = arith.constant 0 : index
    %c7_53 = arith.constant 7 : index
    %c0_54 = arith.constant 0 : index
    %c0_55 = arith.constant 0 : index
    %37 = vector.load %arg2[%c0_52, %c7_53, %c0_54, %c0_55] : memref<1x16x4x128xf32, #tpu.memory_space<vmem>>, vector<1x1x4x128xf32>
    %38 = vector.shape_cast %37 : vector<1x1x4x128xf32> to vector<1x4x128xf32>
    %39 = vector.shape_cast %36 : vector<1x4x128xf32> to vector<1x1x4x128xf32>
    tpu.vector_store %arg2[%c0_52, %c7_53, %c0_54, %c0_55], %39 {strides = array<i32>} : memref<1x16x4x128xf32, #tpu.memory_space<vmem>>, vector<1x1x4x128xf32>,
    %c0_56 = arith.constant 0 : index
    %c0_57 = arith.constant 0 : index
    %c8 = arith.constant 8 : index
    %c0_58 = arith.constant 0 : index
    %40 = vector.load %arg1[%c0_56, %c0_57, %c8, %c0_58] : memref<1x4x16x128xf32, #tpu.memory_space<vmem>>, vector<1x4x1x128xf32>
    %41 = vector.shape_cast %40 : vector<1x4x1x128xf32> to vector<1x4x128xf32>
    %c0_59 = arith.constant 0 : index
    %c8_60 = arith.constant 8 : index
    %c0_61 = arith.constant 0 : index
    %c0_62 = arith.constant 0 : index
    %42 = vector.load %arg2[%c0_59, %c8_60, %c0_61, %c0_62] : memref<1x16x4x128xf32, #tpu.memory_space<vmem>>, vector<1x1x4x128xf32>
    %43 = vector.shape_cast %42 : vector<1x1x4x128xf32> to vector<1x4x128xf32>
    %44 = vector.shape_cast %41 : vector<1x4x128xf32> to vector<1x1x4x128xf32>
    tpu.vector_store %arg2[%c0_59, %c8_60, %c0_61, %c0_62], %44 {strides = array<i32>} : memref<1x16x4x128xf32, #tpu.memory_space<vmem>>, vector<1x1x4x128xf32>,
    %c0_63 = arith.constant 0 : index
    %c0_64 = arith.constant 0 : index
    %c9 = arith.constant 9 : index
    %c0_65 = arith.constant 0 : index
    %45 = vector.load %arg1[%c0_63, %c0_64, %c9, %c0_65] : memref<1x4x16x128xf32, #tpu.memory_space<vmem>>, vector<1x4x1x128xf32>
    %46 = vector.shape_cast %45 : vector<1x4x1x128xf32> to vector<1x4x128xf32>
    %c0_66 = arith.constant 0 : index
    %c9_67 = arith.constant 9 : index
    %c0_68 = arith.constant 0 : index
    %c0_69 = arith.constant 0 : index
    %47 = vector.load %arg2[%c0_66, %c9_67, %c0_68, %c0_69] : memref<1x16x4x128xf32, #tpu.memory_space<vmem>>, vector<1x1x4x128xf32>
    %48 = vector.shape_cast %47 : vector<1x1x4x128xf32> to vector<1x4x128xf32>
    %49 = vector.shape_cast %46 : vector<1x4x128xf32> to vector<1x1x4x128xf32>
    tpu.vector_store %arg2[%c0_66, %c9_67, %c0_68, %c0_69], %49 {strides = array<i32>} : memref<1x16x4x128xf32, #tpu.memory_space<vmem>>, vector<1x1x4x128xf32>,
    %c0_70 = arith.constant 0 : index
    %c0_71 = arith.constant 0 : index
    %c10 = arith.constant 10 : index
    %c0_72 = arith.constant 0 : index
    %50 = vector.load %arg1[%c0_70, %c0_71, %c10, %c0_72] : memref<1x4x16x128xf32, #tpu.memory_space<vmem>>, vector<1x4x1x128xf32>
    %51 = vector.shape_cast %50 : vector<1x4x1x128xf32> to vector<1x4x128xf32>
    %c0_73 = arith.constant 0 : index
    %c10_74 = arith.constant 10 : index
    %c0_75 = arith.constant 0 : index
    %c0_76 = arith.constant 0 : index
    %52 = vector.load %arg2[%c0_73, %c10_74, %c0_75, %c0_76] : memref<1x16x4x128xf32, #tpu.memory_space<vmem>>, vector<1x1x4x128xf32>
    %53 = vector.shape_cast %52 : vector<1x1x4x128xf32> to vector<1x4x128xf32>
    %54 = vector.shape_cast %51 : vector<1x4x128xf32> to vector<1x1x4x128xf32>
    tpu.vector_store %arg2[%c0_73, %c10_74, %c0_75, %c0_76], %54 {strides = array<i32>} : memref<1x16x4x128xf32, #tpu.memory_space<vmem>>, vector<1x1x4x128xf32>,
    %c0_77 = arith.constant 0 : index
    %c0_78 = arith.constant 0 : index
    %c11 = arith.constant 11 : index
    %c0_79 = arith.constant 0 : index
    %55 = vector.load %arg1[%c0_77, %c0_78, %c11, %c0_79] : memref<1x4x16x128xf32, #tpu.memory_space<vmem>>, vector<1x4x1x128xf32>
    %56 = vector.shape_cast %55 : vector<1x4x1x128xf32> to vector<1x4x128xf32>
    %c0_80 = arith.constant 0 : index
    %c11_81 = arith.constant 11 : index
    %c0_82 = arith.constant 0 : index
    %c0_83 = arith.constant 0 : index
    %57 = vector.load %arg2[%c0_80, %c11_81, %c0_82, %c0_83] : memref<1x16x4x128xf32, #tpu.memory_space<vmem>>, vector<1x1x4x128xf32>
    %58 = vector.shape_cast %57 : vector<1x1x4x128xf32> to vector<1x4x128xf32>
    %59 = vector.shape_cast %56 : vector<1x4x128xf32> to vector<1x1x4x128xf32>
    tpu.vector_store %arg2[%c0_80, %c11_81, %c0_82, %c0_83], %59 {strides = array<i32>} : memref<1x16x4x128xf32, #tpu.memory_space<vmem>>, vector<1x1x4x128xf32>,
    %c0_84 = arith.constant 0 : index
    %c0_85 = arith.constant 0 : index
    %c12 = arith.constant 12 : index
    %c0_86 = arith.constant 0 : index
    %60 = vector.load %arg1[%c0_84, %c0_85, %c12, %c0_86] : memref<1x4x16x128xf32, #tpu.memory_space<vmem>>, vector<1x4x1x128xf32>
    %61 = vector.shape_cast %60 : vector<1x4x1x128xf32> to vector<1x4x128xf32>
    %c0_87 = arith.constant 0 : index
    %c12_88 = arith.constant 12 : index
    %c0_89 = arith.constant 0 : index
    %c0_90 = arith.constant 0 : index
    %62 = vector.load %arg2[%c0_87, %c12_88, %c0_89, %c0_90] : memref<1x16x4x128xf32, #tpu.memory_space<vmem>>, vector<1x1x4x128xf32>
    %63 = vector.shape_cast %62 : vector<1x1x4x128xf32> to vector<1x4x128xf32>
    %64 = vector.shape_cast %61 : vector<1x4x128xf32> to vector<1x1x4x128xf32>
    tpu.vector_store %arg2[%c0_87, %c12_88, %c0_89, %c0_90], %64 {strides = array<i32>} : memref<1x16x4x128xf32, #tpu.memory_space<vmem>>, vector<1x1x4x128xf32>,
    %c0_91 = arith.constant 0 : index
    %c0_92 = arith.constant 0 : index
    %c13 = arith.constant 13 : index
    %c0_93 = arith.constant 0 : index
    %65 = vector.load %arg1[%c0_91, %c0_92, %c13, %c0_93] : memref<1x4x16x128xf32, #tpu.memory_space<vmem>>, vector<1x4x1x128xf32>
    %66 = vector.shape_cast %65 : vector<1x4x1x128xf32> to vector<1x4x128xf32>
    %c0_94 = arith.constant 0 : index
    %c13_95 = arith.constant 13 : index
    %c0_96 = arith.constant 0 : index
    %c0_97 = arith.constant 0 : index
    %67 = vector.load %arg2[%c0_94, %c13_95, %c0_96, %c0_97] : memref<1x16x4x128xf32, #tpu.memory_space<vmem>>, vector<1x1x4x128xf32>
    %68 = vector.shape_cast %67 : vector<1x1x4x128xf32> to vector<1x4x128xf32>
    %69 = vector.shape_cast %66 : vector<1x4x128xf32> to vector<1x1x4x128xf32>
    tpu.vector_store %arg2[%c0_94, %c13_95, %c0_96, %c0_97], %69 {strides = array<i32>} : memref<1x16x4x128xf32, #tpu.memory_space<vmem>>, vector<1x1x4x128xf32>,
    %c0_98 = arith.constant 0 : index
    %c0_99 = arith.constant 0 : index
    %c14 = arith.constant 14 : index
    %c0_100 = arith.constant 0 : index
    %70 = vector.load %arg1[%c0_98, %c0_99, %c14, %c0_100] : memref<1x4x16x128xf32, #tpu.memory_space<vmem>>, vector<1x4x1x128xf32>
    %71 = vector.shape_cast %70 : vector<1x4x1x128xf32> to vector<1x4x128xf32>
    %c0_101 = arith.constant 0 : index
    %c14_102 = arith.constant 14 : index
    %c0_103 = arith.constant 0 : index
    %c0_104 = arith.constant 0 : index
    %72 = vector.load %arg2[%c0_101, %c14_102, %c0_103, %c0_104] : memref<1x16x4x128xf32, #tpu.memory_space<vmem>>, vector<1x1x4x128xf32>
    %73 = vector.shape_cast %72 : vector<1x1x4x128xf32> to vector<1x4x128xf32>
    %74 = vector.shape_cast %71 : vector<1x4x128xf32> to vector<1x1x4x128xf32>
    tpu.vector_store %arg2[%c0_101, %c14_102, %c0_103, %c0_104], %74 {strides = array<i32>} : memref<1x16x4x128xf32, #tpu.memory_space<vmem>>, vector<1x1x4x128xf32>,
    %c0_105 = arith.constant 0 : index
    %c0_106 = arith.constant 0 : index
    %c15 = arith.constant 15 : index
    %c0_107 = arith.constant 0 : index
    %75 = vector.load %arg1[%c0_105, %c0_106, %c15, %c0_107] : memref<1x4x16x128xf32, #tpu.memory_space<vmem>>, vector<1x4x1x128xf32>
    %76 = vector.shape_cast %75 : vector<1x4x1x128xf32> to vector<1x4x128xf32>
    %c0_108 = arith.constant 0 : index
    %c15_109 = arith.constant 15 : index
    %c0_110 = arith.constant 0 : index
    %c0_111 = arith.constant 0 : index
    %77 = vector.load %arg2[%c0_108, %c15_109, %c0_110, %c0_111] : memref<1x16x4x128xf32, #tpu.memory_space<vmem>>, vector<1x1x4x128xf32>
    %78 = vector.shape_cast %77 : vector<1x1x4x128xf32> to vector<1x4x128xf32>
    %79 = vector.shape_cast %76 : vector<1x4x128xf32> to vector<1x1x4x128xf32>
    tpu.vector_store %arg2[%c0_108, %c15_109, %c0_110, %c0_111], %79 {strides = array<i32>} : memref<1x16x4x128xf32, #tpu.memory_space<vmem>>, vector<1x1x4x128xf32>,
    return
  }
  func.func @transform_0(%arg0: i32) -> (i32, i32, i32, i32) {
    %c0_i32 = arith.constant 0 : i32
    %c0_i32_0 = arith.constant 0 : i32
    %c0_i32_1 = arith.constant 0 : i32
    %c0_i32_2 = arith.constant 0 : i32
    return %arg0, %c0_i32, %c0_i32_0, %c0_i32_1 : i32, i32, i32, i32
  }
  func.func @transform_1(%arg0: i32) -> (i32, i32, i32, i32) {
    %c0_i32 = arith.constant 0 : i32
    %c0_i32_0 = arith.constant 0 : i32
    %c0_i32_1 = arith.constant 0 : i32
    %c0_i32_2 = arith.constant 0 : i32
    return %arg0, %c0_i32, %c0_i32_0, %c0_i32_1 : i32, i32, i32, i32
  }
}

</mosaic_0001>

<bundles_post_ra>
// kernel: permute_pallas.1
= control target key start
LH: loop header
LB: loop body
LE: loop exit
PB: predicated region body
PF: predicated region fallthrough
CT: control target
= control target key end

     0   :  { %6 = vsyncpa [#allocation3], 0  ;;  %s990_s0 = inlined_call_operand.hbm [shape: f32[2,4,16,128], index: 0, kind: input, shape index: {}]   ;;  %s991_s1 = inlined_call_operand.hbm [shape: f32[2,16,4,128], index: 1, kind: output, shape index: {}]  }
   0x1   :  { %8 = vsyncpa [#allocation3 + $0x1], 0 }
   0x2   :  { %9 = vsyncpa [#allocation4], 0 }
   0x3   :  { %11 = vsyncpa [#allocation4 + $0x1], 0  ;;  %s691_s6 = smov 0   ;;  %s693_s7 = smov 0  }
   0x4   :  { %s695_s8 = smov 0   ;;  %s697_s9 = smov 0  }
   0x5 LB: > { %s712_s10 = sadd.s32 4294967295, %s673_s9   ;;  %s496_s11 = sadd.s32 4294967294, %s673_s9   ;;  %s673_s9 = sphi %s697_s9, %s1004_s9   ;;  %s669_s8 = sphi %s695_s8, %s1003_s8   ;;  %s665_s7 = sphi %s693_s7, %s1002_s7   ;;  %s661_s6 = sphi %s691_s6, %s1001_s6  }
   0x6   : > { %s716_s12 = sadd.s32 1, %s673_s9   ;;  %s24_s13 = sadd.s32 1, %s669_s8 }
   0x7   : > { %s21_s14 = ssub.s32 %s673_s9, %s716_s12  ;;  %p31_p0 = scmp.ne.s32.totalorder %s669_s8, %s665_s7 }
   0x8   : > { %p22_p1 = scmp.eq.s32.totalorder %s21_s14, 0  ;;  %p32_p2 = scmp.eq.s32.totalorder %s673_s9, 0 }
   0x9   : > { %p37_p3 = scmp.ne.s32.totalorder %s665_s7, %s661_s6  ;;  %p38_p4 = scmp.eq.s32.totalorder %s712_s10, 0 }
   0xa   : > { %s728_s15 = scalar_select %p22_p1, %s669_s8, %s24_s13  }
   0xb   : > { %p730_p5 = por %p32_p2, %p31_p0  ;;  %p734_p6 = por %p38_p4, %p37_p3 }
   0xc   : > { %p61_p7 = scmp.eq.s32.totalorder %s712_s10, 1  ;;  %p67_p8 = scmp.eq.s32.totalorder %s496_s11, 1 }
   0xd   : > { %p539_p10 = scmp.lt.s32.totalorder %s673_s9, 2  ;;  %s87_s20 = sand.u32 1, %s669_s8  }
   0xe   : > { %p741_p11 = por %p61_p7, %p31_p0  ;;  %p745_p12 = por %p67_p8, %p37_p3 }
   0xf   : > { %s525_s21 = sshll.u32 %s673_s9, 10  ;;  %s499_s22 = sshll.u32 %s87_s20, 6 }
  0x10   : > { %s995_s18 = scalar_select %p741_p11, 1, 0 }
  0x11   : > { %s996_s19 = scalar_select %p745_p12, 1, 0 }
  0x12   : > { %s754_s25 = scalar_lea.hbm %s990_s0, %s525_s21  ;;  %s91_s26 = scalar_lea.vmem [#allocation2], %s499_s22 }
  0x13   : > { %s98_s27 = sshll.u32 %s91_s26, 4  ;;  %p758_p13 = pnand %p539_p10, %p730_p5  ;;  %s762_s27 = int_to_ptr.vmem [resolvable:$true] %s98_s27 }
  0x14   : > { %s764_s29 = scalar_lea.sflag [#allocation3], %s87_s20  ;;  %s577_s30 = scalar_lea.hbm %s754_s25, 1024 }
  0x15   : > { %p578_p0 = scmp.ne.s32.totalorder %s754_s25, %s577_s30  ;;  %p579_p1 = pneg %p758_p13 }
  0x16   : > { %s582_s4 = scalar_lea.hbm %s990_s0, 2048  ;;  %p583_p4 = scmp.lt.u32.totalorder %s754_s25, %s990_s0 }
  0x17   : > { %p580_p2 = pnand %p579_p1, %p578_p0  ;;  %p584_p5 = scmp.lt.u32.totalorder %s582_s4, %s577_s30 }
  0x18   : > { %p586_p8 = scmp.lt.u32.totalorder %s577_s30, %s754_s25 }
  0x19   : > { %p581_p3 = pneg %p580_p2  ;;  %p585_p7 = por %p584_p5, %p583_p4 }
  0x1b   : > { %p587_p10 = por %p586_p8, %p585_p7 }
  0x1d   : > { %p588_p9 = pnand %p587_p10, %p581_p3 }
  0x1f   : > { %591 = shalt.err (!%p588_p9)
}
  0x20   : > { %s592_s13 = scalar_lea.vmem %s762_s27, 1024  ;;  %s675_s14 = smov [#allocation2]  }
  0x21   : > { %p593_p0 = scmp.ne.s32.totalorder %s762_s27, %s592_s13  ;;  %s597_s16 = sshll.u32 %s675_s14, 4  ;;  %s598_s16 = int_to_ptr.vmem [resolvable:$false] %s597_s16 }
  0x22   : > { %s599_s20 = scalar_lea.vmem %s598_s16, 2048  ;;  %p600_p11 = scmp.lt.s32.totalorder %s762_s27, %s598_s16 }
  0x23   : > { %p595_p2 = pnand %p593_p0, %p579_p1  ;;  %p601_p4 = scmp.lt.s32.totalorder %s599_s20, %s592_s13 }
  0x25   : > { %p596_p12 = pneg %p595_p2  ;;  %p602_p5 = por %p601_p4, %p600_p11 }
  0x27   : > { %p603_p7 = pnand %p602_p5, %p596_p12 }
  0x29   : > { %606 = shalt.err (!%p603_p7)
}
  0x2a   : > { %s676_s21 = smov 128   ;;  %s677_s22 = smov 8  }
  0x2b   : > { %534 = dma.hbm_to_vmem [thread:$0]  (!%p758_p13), %s754_s25, 1024, %s762_s27, %s764_s29, %s676_s21, %s676_s21, %s677_s22  }
  0x2c   : > { %p502_p9 = scmp.ge.s32.totalorder %s673_s9, 1  ;;  %p106_p1 = scmp.lt.s32.totalorder %s673_s9, 3 }
  0x2e   : > { %p107_p3 = pnand %p502_p9, %p106_p1 }
  0x2f   : > { %s795_s23 = sand.u32 (!%p107_p3), 1, %s665_s7  }
  0x30   : > { %110 = sbr.rel (%p107_p3) target bundleno = 111 (0x6f), region = 24  ;;  %s503_s24 = sshll.u32 (!%p107_p3), %s795_s23, 6 }
  0x31   : > { %s113_s26 = scalar_lea.sflag (!%p107_p3), [#allocation3], %s795_s23  ;;  %s801_s30 = scalar_lea.vmem (!%p107_p3), [#allocation2], %s503_s24 }
  0x37   : > { %652 = dma.done.wait (%p734_p6), %s113_s26, 1024  }
  0x38   : > { %654 = vsyncadd (%p734_p6), %s113_s26, 4294966272  ;;  %vm144_vm0 = vcmask 1041409   ;;  %vm147_vm1 = vcmask 1042434   ;;  %v135_v0 = vld [vmem:[%s801_s30] sm:$0x1]  ;;  %vm150_vm2 = vcmask 1043459  }
  0x39   : > { %v136_v1 = vld [vmem:[%s801_s30 + $0x10] sm:$0x1]  ;;  %v137_v2 = vld [vmem:[%s801_s30 + $0x20] sm:$0x1]  ;;  %v154_v6 = vld [vmem:[%s801_s30 + $0x1] sm:$0x1] }
  0x3a   : > { %v138_v3 = vld [vmem:[%s801_s30 + $0x30] sm:$0x1]  ;;  %v143_v4 = vrot.slane %v136_v1, 7  ;;  %v146_v5 = vrot.slane %v137_v2, 6  ;;  %v155_v8 = vld [vmem:[%s801_s30 + $0x11] sm:$0x1] }
  0x3b   : > { %v149_v7 = vrot.slane %v138_v3, 5  ;;  %v156_v9 = vld [vmem:[%s801_s30 + $0x21] sm:$0x1]  ;;  %v157_v11 = vld [vmem:[%s801_s30 + $0x31] sm:$0x1]  ;;  %v162_v12 = vrot.slane %v155_v8, 7 }
  0x3c   : > { %v145_v10 = vsel %vm144_vm0, %v143_v4, %v135_v0  ;;  %v164_v13 = vrot.slane %v156_v9, 6  ;;  %v171_v14 = vld [vmem:[%s801_s30 + $0x2] sm:$0x1]  ;;  %v166_v16 = vrot.slane %v157_v11, 5  ;;  %v172_v17 = vld [vmem:[%s801_s30 + $0x12] sm:$0x1] }
  0x3d   : > { %v148_v15 = vsel %vm147_vm1, %v146_v5, %v145_v10  ;;  %v173_v18 = vld [vmem:[%s801_s30 + $0x22] sm:$0x1]  ;;  %v163_v20 = vsel %vm144_vm0, %v162_v12, %v154_v6  ;;  %v174_v21 = vld [vmem:[%s801_s30 + $0x32] sm:$0x1]  ;;  %v179_v22 = vrot.slane %v172_v17, 7  ;;  %s826_s17 = scalar_lea.vmem [#allocation5], %s503_s24 }
  0x3e   : > { %v151_v19 = vsel %vm150_vm2, %v149_v7, %v148_v15  ;;  %v181_v23 = vrot.slane %v173_v18, 6  ;;  %v188_v24 = vld [vmem:[%s801_s30 + $0x3] sm:$0x1]  ;;  %v165_v25 = vsel %vm147_vm1, %v164_v13, %v163_v20  ;;  %v183_v26 = vrot.slane %v174_v21, 5  ;;  %v189_v27 = vld [vmem:[%s801_s30 + $0x13] sm:$0x1] }
  0x3f   : > { %153 = vst [vmem:[%s826_s17] sm:$0xf] %v151_v19  ;;  %v190_v28 = vld [vmem:[%s801_s30 + $0x23] sm:$0x1]  ;;  %v167_v29 = vsel %vm150_vm2, %v166_v16, %v165_v25  ;;  %v180_v30 = vsel %vm144_vm0, %v179_v22, %v171_v14  ;;  %v191_v31 = vld [vmem:[%s801_s30 + $0x33] sm:$0x1]  ;;  %v196_v32 = vrot.slane %v189_v27, 7 }
  0x40   : > { %v198_v33 = vrot.slane %v190_v28, 6  ;;  %v205_v34 = vld [vmem:[%s801_s30 + $0x4] sm:$0x1]  ;;  %505 = vst [vmem:[%s826_s17 + $0x4] sm:$0xf] %v167_v29  ;;  %v182_v35 = vsel %vm147_vm1, %v181_v23, %v180_v30  ;;  %v200_v36 = vrot.slane %v191_v31, 5 }
  0x41   : > { %v206_v37 = vld [vmem:[%s801_s30 + $0x14] sm:$0x1]  ;;  %v207_v38 = vld [vmem:[%s801_s30 + $0x24] sm:$0x1]  ;;  %v184_v39 = vsel %vm150_vm2, %v183_v26, %v182_v35  ;;  %v197_v40 = vsel %vm144_vm0, %v196_v32, %v188_v24  ;;  %v222_v44 = vld [vmem:[%s801_s30 + $0x5] sm:$0x1] }
  0x42   : > { %v208_v41 = vld [vmem:[%s801_s30 + $0x34] sm:$0x1]  ;;  %v213_v42 = vrot.slane %v206_v37, 7  ;;  %v215_v43 = vrot.slane %v207_v38, 6  ;;  %506 = vst [vmem:[%s826_s17 + $0x8] sm:$0xf] %v184_v39  ;;  %v199_v45 = vsel %vm147_vm1, %v198_v33, %v197_v40 }
  0x43   : > { %v217_v46 = vrot.slane %v208_v41, 5  ;;  %v223_v47 = vld [vmem:[%s801_s30 + $0x15] sm:$0x1]  ;;  %v224_v48 = vld [vmem:[%s801_s30 + $0x25] sm:$0x1]  ;;  %v201_v49 = vsel %vm150_vm2, %v200_v36, %v199_v45  ;;  %s526_s25 = sshll.u32 %s712_s10, 10 }
  0x44   : > { %v214_v50 = vsel %vm144_vm0, %v213_v42, %v205_v34  ;;  %v225_v51 = vld [vmem:[%s801_s30 + $0x35] sm:$0x1]  ;;  %v230_v52 = vrot.slane %v223_v47, 7  ;;  %v232_v53 = vrot.slane %v224_v48, 6  ;;  %v239_v54 = vld [vmem:[%s801_s30 + $0x6] sm:$0x1]  ;;  %s940_s29 = scalar_lea.hbm %s991_s1, %s526_s25 }
  0x45   : > { %507 = vst [vmem:[%s826_s17 + $0xc] sm:$0xf] %v201_v49  ;;  %v216_v55 = vsel %vm147_vm1, %v215_v43, %v214_v50  ;;  %v234_v56 = vrot.slane %v225_v51, 5  ;;  %v240_v57 = vld [vmem:[%s801_s30 + $0x16] sm:$0x1]  ;;  %s423_s27 = sshll.u32 %s826_s17, 4  ;;  %s942_s27 = int_to_ptr.vmem [resolvable:$true] %s423_s27 }
  0x46   : > { %v241_v58 = vld [vmem:[%s801_s30 + $0x26] sm:$0x1]  ;;  %v218_v59 = vsel %vm150_vm2, %v217_v46, %v216_v55  ;;  %v231_v60 = vsel %vm144_vm0, %v230_v52, %v222_v44  ;;  %v242_v61 = vld [vmem:[%s801_s30 + $0x36] sm:$0x1]  ;;  %v247_v62 = vrot.slane %v240_v57, 7  ;;  %s410_s2 = scalar_lea.sflag [#allocation4], %s795_s23 }
  0x47   : > { %v249_v63 = vrot.slane %v241_v58, 6  ;;  %v256_v0 = vld [vmem:[%s801_s30 + $0x7] sm:$0x1]  ;;  %508 = vst [vmem:[%s826_s17 + $0x10] sm:$0xf] %v218_v59  ;;  %v233_v1 = vsel %vm147_vm1, %v232_v53, %v231_v60  ;;  %v251_v2 = vrot.slane %v242_v61, 5 }
  0x48   : > { %v257_v3 = vld [vmem:[%s801_s30 + $0x17] sm:$0x1]  ;;  %v258_v4 = vld [vmem:[%s801_s30 + $0x27] sm:$0x1]  ;;  %v235_v5 = vsel %vm150_vm2, %v234_v56, %v233_v1  ;;  %v248_v6 = vsel %vm144_vm0, %v247_v62, %v239_v54  ;;  %v273_v10 = vld [vmem:[%s801_s30 + $0x8] sm:$0x1] }
  0x49   : > { %v259_v7 = vld [vmem:[%s801_s30 + $0x37] sm:$0x1]  ;;  %v264_v8 = vrot.slane %v257_v3, 7  ;;  %v266_v9 = vrot.slane %v258_v4, 6  ;;  %509 = vst [vmem:[%s826_s17 + $0x14] sm:$0xf] %v235_v5  ;;  %v250_v11 = vsel %vm147_vm1, %v249_v63, %v248_v6 }
  0x4a   : > { %v268_v12 = vrot.slane %v259_v7, 5  ;;  %v274_v13 = vld [vmem:[%s801_s30 + $0x18] sm:$0x1]  ;;  %v275_v14 = vld [vmem:[%s801_s30 + $0x28] sm:$0x1]  ;;  %v252_v15 = vsel %vm150_vm2, %v251_v2, %v250_v11  ;;  %s607_s3 = scalar_lea.vmem %s942_s27, 1024 }
  0x4b   : > { %v265_v16 = vsel %vm144_vm0, %v264_v8, %v256_v0  ;;  %v276_v17 = vld [vmem:[%s801_s30 + $0x38] sm:$0x1]  ;;  %v281_v18 = vrot.slane %v274_v13, 7  ;;  %v283_v19 = vrot.slane %v275_v14, 6  ;;  %v290_v20 = vld [vmem:[%s801_s30 + $0x9] sm:$0x1]  ;;  %p608_p6 = scmp.ne.s32.totalorder %s942_s27, %s607_s3 }
  0x4c   : > { %510 = vst [vmem:[%s826_s17 + $0x18] sm:$0xf] %v252_v15  ;;  %v267_v21 = vsel %vm147_vm1, %v266_v9, %v265_v16  ;;  %v285_v22 = vrot.slane %v276_v17, 5  ;;  %v291_v23 = vld [vmem:[%s801_s30 + $0x19] sm:$0x1]  ;;  %p998_p11 = scmp.ne.s32.totalorder %s995_s18, 0 }
  0x4d   : > { %v292_v24 = vld [vmem:[%s801_s30 + $0x29] sm:$0x1]  ;;  %v269_v25 = vsel %vm150_vm2, %v268_v12, %v267_v21  ;;  %v282_v26 = vsel %vm144_vm0, %v281_v18, %v273_v10  ;;  %v293_v27 = vld [vmem:[%s801_s30 + $0x39] sm:$0x1]  ;;  %v298_v28 = vrot.slane %v291_v23, 7  ;;  %s678_s4 = smov [#allocation5]  }
  0x4e   : > { %v300_v29 = vrot.slane %v292_v24, 6  ;;  %v307_v30 = vld [vmem:[%s801_s30 + $0xa] sm:$0x1]  ;;  %511 = vst [vmem:[%s826_s17 + $0x1c] sm:$0xf] %v269_v25  ;;  %v284_v31 = vsel %vm147_vm1, %v283_v19, %v282_v26  ;;  %v302_v32 = vrot.slane %v293_v27, 5  ;;  %p609_p12 = pnand %p608_p6, %p998_p11 }
  0x4f   : > { %v308_v33 = vld [vmem:[%s801_s30 + $0x1a] sm:$0x1]  ;;  %v309_v34 = vld [vmem:[%s801_s30 + $0x2a] sm:$0x1]  ;;  %v286_v35 = vsel %vm150_vm2, %v285_v22, %v284_v31  ;;  %v299_v36 = vsel %vm144_vm0, %v298_v28, %v290_v20  ;;  %v324_v40 = vld [vmem:[%s801_s30 + $0xb] sm:$0x1] }
  0x50   : > { %v310_v37 = vld [vmem:[%s801_s30 + $0x3a] sm:$0x1]  ;;  %v315_v38 = vrot.slane %v308_v33, 7  ;;  %v317_v39 = vrot.slane %v309_v34, 6  ;;  %512 = vst [vmem:[%s826_s17 + $0x20] sm:$0xf] %v286_v35  ;;  %v301_v41 = vsel %vm147_vm1, %v300_v29, %v299_v36  ;;  %p610_p13 = pneg %p609_p12 }
  0x51   : > { %v319_v42 = vrot.slane %v310_v37, 5  ;;  %v325_v43 = vld [vmem:[%s801_s30 + $0x1b] sm:$0x1]  ;;  %v326_v44 = vld [vmem:[%s801_s30 + $0x2b] sm:$0x1]  ;;  %v303_v45 = vsel %vm150_vm2, %v302_v32, %v301_v41  ;;  %s611_s5 = sshll.u32 %s678_s4, 4  ;;  %s612_s5 = int_to_ptr.vmem [resolvable:$false] %s611_s5 }
  0x52   : > { %v316_v46 = vsel %vm144_vm0, %v315_v38, %v307_v30  ;;  %v327_v47 = vld [vmem:[%s801_s30 + $0x3b] sm:$0x1]  ;;  %v332_v48 = vrot.slane %v325_v43, 7  ;;  %v334_v49 = vrot.slane %v326_v44, 6  ;;  %v341_v50 = vld [vmem:[%s801_s30 + $0xc] sm:$0x1]  ;;  %p614_p8 = scmp.lt.s32.totalorder %s942_s27, %s612_s5 }
  0x53   : > { %513 = vst [vmem:[%s826_s17 + $0x24] sm:$0xf] %v303_v45  ;;  %v318_v51 = vsel %vm147_vm1, %v317_v39, %v316_v46  ;;  %v336_v52 = vrot.slane %v327_v47, 5  ;;  %v342_v53 = vld [vmem:[%s801_s30 + $0x1c] sm:$0x1]  ;;  %s613_s11 = scalar_lea.vmem %s612_s5, 2048 }
  0x54   : > { %v343_v54 = vld [vmem:[%s801_s30 + $0x2c] sm:$0x1]  ;;  %v320_v55 = vsel %vm150_vm2, %v319_v42, %v318_v51  ;;  %v333_v56 = vsel %vm144_vm0, %v332_v48, %v324_v40  ;;  %v344_v57 = vld [vmem:[%s801_s30 + $0x3c] sm:$0x1]  ;;  %v349_v58 = vrot.slane %v342_v53, 7  ;;  %p615_p10 = scmp.lt.s32.totalorder %s613_s11, %s607_s3 }
  0x55   : > { %v351_v59 = vrot.slane %v343_v54, 6  ;;  %v358_v60 = vld [vmem:[%s801_s30 + $0xd] sm:$0x1]  ;;  %514 = vst [vmem:[%s826_s17 + $0x28] sm:$0xf] %v320_v55  ;;  %v335_v61 = vsel %vm147_vm1, %v334_v49, %v333_v56  ;;  %v353_v62 = vrot.slane %v344_v57, 5 }
  0x56   : > { %v359_v63 = vld [vmem:[%s801_s30 + $0x1d] sm:$0x1]  ;;  %v360_v0 = vld [vmem:[%s801_s30 + $0x2d] sm:$0x1]  ;;  %v337_v1 = vsel %vm150_vm2, %v336_v52, %v335_v61  ;;  %v350_v2 = vsel %vm144_vm0, %v349_v58, %v341_v50  ;;  %v375_v6 = vld [vmem:[%s801_s30 + $0xe] sm:$0x1]  ;;  %p616_p0 = por %p615_p10, %p614_p8 }
  0x57   : > { %v361_v3 = vld [vmem:[%s801_s30 + $0x3d] sm:$0x1]  ;;  %v366_v4 = vrot.slane %v359_v63, 7  ;;  %v368_v5 = vrot.slane %v360_v0, 6  ;;  %515 = vst [vmem:[%s826_s17 + $0x2c] sm:$0xf] %v337_v1  ;;  %v352_v7 = vsel %vm147_vm1, %v351_v59, %v350_v2 }
  0x58   : > { %v370_v8 = vrot.slane %v361_v3, 5  ;;  %v376_v9 = vld [vmem:[%s801_s30 + $0x1e] sm:$0x1]  ;;  %v377_v10 = vld [vmem:[%s801_s30 + $0x2e] sm:$0x1]  ;;  %v354_v11 = vsel %vm150_vm2, %v353_v62, %v352_v7  ;;  %p617_p2 = pnand %p616_p0, %p610_p13 }
  0x59   : > { %v367_v12 = vsel %vm144_vm0, %v366_v4, %v358_v60  ;;  %v378_v13 = vld [vmem:[%s801_s30 + $0x3e] sm:$0x1]  ;;  %v383_v14 = vrot.slane %v376_v9, 7  ;;  %v385_v15 = vrot.slane %v377_v10, 6  ;;  %v392_v16 = vld [vmem:[%s801_s30 + $0xf] sm:$0x1] }
  0x5a   : > { %516 = vst [vmem:[%s826_s17 + $0x30] sm:$0xf] %v354_v11  ;;  %v369_v17 = vsel %vm147_vm1, %v368_v5, %v367_v12  ;;  %v387_v18 = vrot.slane %v378_v13, 5  ;;  %v393_v19 = vld [vmem:[%s801_s30 + $0x1f] sm:$0x1] }
  0x5b   : > { %v394_v20 = vld [vmem:[%s801_s30 + $0x2f] sm:$0x1]  ;;  %v371_v21 = vsel %vm150_vm2, %v370_v8, %v369_v17  ;;  %v384_v22 = vsel %vm144_vm0, %v383_v14, %v375_v6  ;;  %v395_v23 = vld [vmem:[%s801_s30 + $0x3f] sm:$0x1]  ;;  %v400_v24 = vrot.slane %v393_v19, 7 }
  0x5c   : > { %v402_v25 = vrot.slane %v394_v20, 6  ;;  %517 = vst [vmem:[%s826_s17 + $0x34] sm:$0xf] %v371_v21  ;;  %v386_v26 = vsel %vm147_vm1, %v385_v15, %v384_v22  ;;  %v404_v27 = vrot.slane %v395_v23, 5 }
  0x5d   : > { %v388_v28 = vsel %vm150_vm2, %v387_v18, %v386_v26  ;;  %v401_v29 = vsel %vm144_vm0, %v400_v24, %v392_v16 }
  0x5e   : > { %518 = vst [vmem:[%s826_s17 + $0x38] sm:$0xf] %v388_v28  ;;  %v403_v30 = vsel %vm147_vm1, %v402_v25, %v401_v29 }
  0x5f   : > { %v405_v31 = vsel %vm150_vm2, %v404_v27, %v403_v30 }
  0x60   : > { %519 = vst [vmem:[%s826_s17 + $0x3c] sm:$0xf] %v405_v31 }
  0x61   : > { %620 = shalt.err (!%p617_p2)
}
  0x62   : > { %s621_s13 = scalar_lea.hbm %s940_s29, 1024  ;;  %s625_s20 = scalar_lea.hbm %s991_s1, 2048 }
  0x63   : > { %p622_p4 = scmp.ne.s32.totalorder %s940_s29, %s621_s13  ;;  %p626_p9 = scmp.lt.u32.totalorder %s940_s29, %s991_s1 }
  0x64   : > { %p627_p1 = scmp.lt.u32.totalorder %s625_s20, %s621_s13  ;;  %p629_p6 = scmp.lt.u32.totalorder %s621_s13, %s940_s29 }
  0x65   : > { %p623_p5 = pnand %p622_p4, %p998_p11 }
  0x66   : > { %p628_p3 = por %p627_p1, %p626_p9 }
  0x67   : > { %p624_p7 = pneg %p623_p5 }
  0x68   : > { %p630_p12 = por %p629_p6, %p628_p3 }
  0x6a   : > { %p631_p13 = pnand %p630_p12, %p624_p7 }
  0x6c   : > { %634 = shalt.err (!%p631_p13)
}
  0x6d   : > { %s679_s24 = smov 64   ;;  %s680_s26 = smov 4  }
  0x6e   : > { %529 = dma.vmem_to_hbm [thread:$0]  (%p998_p11), %s942_s27, 1024, %s940_s29, %s410_s2, %s679_s24, %s679_s24, %s680_s26  }
  0x6f PF: > { %s438_s30 = sand.u32 1, %s661_s6   ;;  %p999_p8 = scmp.ne.s32.totalorder %s996_s19, 0 }
  0x70   : > { %p1000_p10 = scmp.ge.s32.totalorder %s673_s9, 2  ;;  %s439_s17 = scalar_lea.sflag [#allocation4], %s438_s30 }
  0x72   : > { %p536_p0 = pnand %p1000_p10, %p999_p8 }
  0x74   : > { %656 = dma.done.wait (!%p536_p0), %s439_s17, 1024  }
  0x75   : > { %658 = vsyncadd (!%p536_p0), %s439_s17, 4294966272  ;;  %p14_p2 = scmp.ge.s32.totalorder %s716_s12, 4   ;;  %s1001_s6 = smov %s665_s7 }
  0x76   : > { %s1002_s7 = smov %s669_s8  ;;  %s1003_s8 = smov %s728_s15 }
  0x77   : > { %s1004_s9 = smov %s716_s12  ;;  %16 = sbr.rel (!%p14_p2) target bundleno = 5 (0x5), region = 84 }
  0x7e   :  { %444 = vsyncpa [#allocation3], 1 }
  0x7f   :  { %446 = vsyncpa [#allocation3 + $0x1], 1 }
  0x80   :  { %447 = vsyncpa [#allocation4], 1 }
  0x81   :  { %449 = vsyncpa [#allocation4 + $0x1], 1 }

</bundles_post_ra>
